<compile_context>
chip_gen: v6e
topology: v6e:2x2x1
jax: 0.10.0
libtpu: 0.0.40
codegen_flags: <defaults>
</compile_context>

<pallas_src>
import functools

import jax
import jax.numpy as jnp
from jax.experimental import pallas as pl
from jax.experimental.pallas import tpu as pltpu


# ----------------------------- helpers -----------------------------

def _rup(x, m):
    return (x + m - 1) // m * m


def _kn_tiles(K, N):
    # v6e/v7x MXU is 256-wide: prefer 256-multiples once K/N exceed 128; cap at 512
    # so a single grid step's blocks stay comfortably inside VMEM.
    tk = _rup(K, 128) if K <= 128 else min(512, _rup(K, 256))
    tn = _rup(N, 128) if N <= 128 else min(512, _rup(N, 256))
    return tk, tn


# ----------------------------- Pallas kernels -----------------------------

def _matmul_bias_kernel(a_ref, b_ref, bias_ref, o_ref, acc_ref):
    """out = A @ B + bias ; bf16 operands, f32 accumulation, f32 bias epilogue."""
    @pl.when(pl.program_id(2) == 0)
    def _():
        acc_ref[...] = jnp.zeros_like(acc_ref)

    acc_ref[...] += jnp.dot(a_ref[...], b_ref[...],
                            preferred_element_type=jnp.float32)

    @pl.when(pl.program_id(2) == pl.num_programs(2) - 1)
    def _():
        o_ref[...] = (acc_ref[...] + bias_ref[...]).astype(o_ref.dtype)


def _pool_sum_kernel(*refs, inv_ks):
    """Fused adaptive-avg-pool (to the coarsest grid) + cross-level sum.

    Each input block is (1, kh_i, Wt, kw_i, C); output block is (1, Wt, C).
    """
    x_refs, o_ref = refs[:-1], refs[-1]
    acc = jnp.zeros(o_ref.shape, jnp.float32)
    for x_ref, inv_k in zip(x_refs, inv_ks):
        acc = acc + jnp.sum(x_ref[...], axis=(1, 3)) * inv_k
    o_ref[...] = acc


def _upsample_pos_kernel(f_ref, p_ref, o_ref):
    """Nearest upsample of a fused row + pos-embed add, written straight to output.

    f_ref: (1, 1, Wt, 1, C) fused tile; p_ref: (1, C); o_ref: (1, fh, Wt, fw, C).
    """
    up = jnp.broadcast_to(f_ref[...], o_ref.shape)   # nearest-neighbour via broadcast
    o_ref[...] = up + p_ref[...]


# ----------------------------- kernel builders -----------------------------

@functools.lru_cache(maxsize=None)
def _build_reduce_matmul(Mp, Kp, Np, tm, tk, tn):
    grid = (Mp // tm, Np // tn, Kp // tk)
    return pl.pallas_call(
        _matmul_bias_kernel,
        out_shape=jax.ShapeDtypeStruct((Mp, Np), jnp.float32),
        grid_spec=pltpu.PrefetchScalarGridSpec(
            num_scalar_prefetch=0,
            grid=grid,
            in_specs=[
                pl.BlockSpec((tm, tk), lambda i, j, k: (i, k)),
                pl.BlockSpec((tk, tn), lambda i, j, k: (k, j)),
                pl.BlockSpec((1, tn), lambda i, j, k: (0, j)),
            ],
            out_specs=pl.BlockSpec((tm, tn), lambda i, j, k: (i, j)),
            scratch_shapes=[pltpu.VMEM((tm, tn), jnp.float32)],
        ),
        compiler_params=pltpu.CompilerParams(
            dimension_semantics=("parallel", "parallel", "arbitrary")),
    )


@functools.lru_cache(maxsize=None)
def _build_pool_sum(R, Wt, C, kh_kw):
    kernel = functools.partial(
        _pool_sum_kernel, inv_ks=tuple(1.0 / (kh * kw) for kh, kw in kh_kw))
    in_specs = [pl.BlockSpec((1, kh, Wt, kw, C), lambda r: (r, 0, 0, 0, 0))
                for kh, kw in kh_kw]
    return pl.pallas_call(
        kernel,
        out_shape=jax.ShapeDtypeStruct((R, Wt, C), jnp.float32),
        grid_spec=pltpu.PrefetchScalarGridSpec(
            num_scalar_prefetch=0,
            grid=(R,),
            in_specs=in_specs,
            out_specs=pl.BlockSpec((1, Wt, C), lambda r: (r, 0, 0)),
        ),
        compiler_params=pltpu.CompilerParams(dimension_semantics=("parallel",)),
    )


@functools.lru_cache(maxsize=None)
def _build_upsample_pos(R, fh, Wt, fw, C):
    return pl.pallas_call(
        _upsample_pos_kernel,
        out_shape=jax.ShapeDtypeStruct((R, fh, Wt, fw, C), jnp.float32),
        grid_spec=pltpu.PrefetchScalarGridSpec(
            num_scalar_prefetch=0,
            grid=(R,),
            in_specs=[
                pl.BlockSpec((1, 1, Wt, 1, C), lambda r: (r, 0, 0, 0, 0)),
                pl.BlockSpec((1, C), lambda r: (0, 0)),
            ],
            out_specs=pl.BlockSpec((1, fh, Wt, fw, C), lambda r: (r, 0, 0, 0, 0)),
        ),
        compiler_params=pltpu.CompilerParams(dimension_semantics=("parallel",)),
    )


# ----------------------------- op wrappers -----------------------------

def reduce_conv_1x1(x_nhwc, p):
    """nn.Conv2d(kernel_size=1) + bias as a tiled bf16 MXU matmul (f32 accum)."""
    N, H, W, Cin = x_nhwc.shape
    M = N * H * W
    tm = _rup(M, 16) if M <= 256 else 256        # bf16 min tile is (16, 128)
    Mp = _rup(M, tm)
    a = x_nhwc.reshape(M, Cin).astype(jnp.bfloat16)
    if Mp != M or p["Kp"] != Cin:
        a = jnp.pad(a, ((0, Mp - M), (0, p["Kp"] - Cin)))
    out = _build_reduce_matmul(Mp, p["Kp"], p["Np"], tm, p["tk"], p["tn"])(
        a, p["w_pad"], p["b_pad"])
    if Mp != M or p["Np"] != p["N"]:
        out = out[:M, :p["N"]]
    return out.reshape(N, H, W, p["N"])


# ----------------------------- parameters -----------------------------

def _prep_reduce_conv(w, b):
    """Pre-pad + pre-cast the 1x1 conv weight/bias once (hoisted out of forward)."""
    K, N = w.shape
    tk, tn = _kn_tiles(K, N)
    Kp, Np = _rup(K, tk), _rup(N, tn)
    w_pad = jnp.pad(w, ((0, Kp - K), (0, Np - N))).astype(jnp.bfloat16)
    b_pad = jnp.pad(b, (0, Np - N)).reshape(1, Np).astype(jnp.float32)
    return {"w_pad": w_pad, "b_pad": b_pad, "w_ref": w, "b_ref": b,
            "K": K, "N": N, "tk": tk, "tn": tn, "Kp": Kp, "Np": Np}


def build_params(in_channels_list, out_channels, key):
    reduce_params, pos_params = [], []
    for cin in in_channels_list:
        key, kw_, kb_ = jax.random.split(key, 3)
        bound = float(cin) ** -0.5               # ~ nn.Conv2d default init range
        w = jax.random.uniform(kw_, (cin, out_channels), jnp.float32, -bound, bound)
        b = jax.random.uniform(kb_, (out_channels,), jnp.float32, -bound, bound)
        reduce_params.append(_prep_reduce_conv(w, b))
    for _ in in_channels_list:
        key, kp = jax.random.split(key)
        pos_params.append(jax.random.normal(kp, (1, out_channels), jnp.float32))
    return {"out_channels": out_channels, "reduce": reduce_params, "pos": pos_params}


# ----------------------------- LiteFPN forward -----------------------------

def lite_fpn_forward(features_nchw, params):
    C = params["out_channels"]
    feats = [jnp.transpose(f, (0, 2, 3, 1)).astype(jnp.float32)  # NCHW -> NHWC
             for f in features_nchw]

    # 1x1 reduce convs
    reduced = [reduce_conv_1x1(f, p) for f, p in zip(feats, params["reduce"])]

    N = reduced[-1].shape[0]
    Ht, Wt = reduced[-1].shape[1], reduced[-1].shape[2]
    R = N * Ht

    # fused adaptive-avg-pool (to target size) + cross-level sum, single Pallas pass
    views, factors = [], []
    for r in reduced:
        H_i, W_i = r.shape[1], r.shape[2]
        assert H_i % Ht == 0 and W_i % Wt == 0
        kh, kw = H_i // Ht, W_i // Wt
        views.append(r.reshape(R, kh, Wt, kw, C))   # free reshape (split + merge)
        factors.append((kh, kw))
    fused = _build_pool_sum(R, Wt, C, tuple(factors))(*views)   # (R, Wt, C)
    fused5 = fused.reshape(R, 1, Wt, 1, C)                      # free reshape

    # nearest upsample + pos-embed add, written directly as each level's output
    outs = []
    for (fh, fw), pos in zip(factors, params["pos"]):
        o = _build_upsample_pos(R, fh, Wt, fw, C)(fused5, pos)  # (R, fh, Wt, fw, C)
        o = o.reshape(N, Ht * fh, Wt * fw, C)                   # free reshape
        outs.append(jnp.transpose(o, (0, 3, 1, 2)))             # back to NCHW
    return outs


# ----------------------------- pure-JAX reference -----------------------------

def lite_fpn_reference(features_nchw, params):
    feats = [jnp.transpose(f, (0, 2, 3, 1)).astype(jnp.float32) for f in features_nchw]
    reduced = [jnp.einsum("nhwc,co->nhwo", f, p["w_ref"]) + p["b_ref"]
               for f, p in zip(feats, params["reduce"])]
    Ht, Wt = reduced[-1].shape[1], reduced[-1].shape[2]
    resized = []
    for r in reduced:
        N, H, W, C = r.shape
        kh, kw = H // Ht, W // Wt
        resized.append(r.reshape(N, Ht, kh, Wt, kw, C).mean(axis=(2, 4)))
    fused = resized[0]
    for r in resized[1:]:
        fused = fused + r
    outs = []
    for r, pos in zip(reduced, params["pos"]):
        H, W = r.shape[1], r.shape[2]
        fh, fw = H // Ht, W // Wt
        up = jnp.repeat(jnp.repeat(fused, fh, axis=1), fw, axis=2)
        outs.append(jnp.transpose(up + pos.reshape(1, 1, 1, -1), (0, 3, 1, 2)))
    return outs


# ----------------------------- main -----------------------------

if __name__ == "__main__":
    in_channels_list = [32, 64, 128, 256]
    out_channels = 128
    spatial = [16, 8, 4, 2]
    batch = 2

    key = jax.random.PRNGKey(0)
    key, pkey = jax.random.split(key)
    params = build_params(in_channels_list, out_channels, pkey)

    features = []
    for cin, s in zip(in_channels_list, spatial):
        key, k = jax.random.split(key)
        features.append(jax.random.normal(k, (batch, cin, s, s), jnp.float32))

    outs = lite_fpn_forward(features, params)
    for o in outs:
        jax.block_until_ready(o)

    expected = [(batch, out_channels, s, s) for s in spatial]
    got = [tuple(int(d) for d in o.shape) for o in outs]
    assert got == expected, f"unexpected output shapes: {got}"
    assert all(o.dtype == jnp.float32 for o in outs)

    # numeric check vs pure-JAX reference (bf16 MXU operands -> relaxed tolerance)
    refs = lite_fpn_reference(features, params)
    for o, r in zip(outs, refs):
        err = float(jnp.max(jnp.abs(o - r)))
        assert err < 5e-2, f"max abs err {err}"

    print("KERNEL_OK")
</pallas_src>

<mosaic_0001>
module attributes {stable_mosaic.version = 11 : i64} {
  func.func @_matmul_bias_kernel(%arg0: i32, %arg1: i32, %arg2: i32, %arg3: memref<256x128xbf16, #tpu.memory_space<vmem>>, %arg4: memref<128x128xbf16, #tpu.memory_space<vmem>>, %arg5: memref<1x128xf32, #tpu.memory_space<vmem>>, %arg6: memref<256x128xf32, #tpu.memory_space<vmem>>, %arg7: memref<256x128xf32, #tpu.memory_space<vmem>>) attributes {dimension_semantics = [#tpu.dimension_semantics<parallel>, #tpu.dimension_semantics<parallel>, #tpu.dimension_semantics<arbitrary>], iteration_bounds = array<i64: 2, 1, 1>, scalar_prefetch = 0 : i64, scratch_operands = 1 : i64, tpu.core_type = #tpu.core_type<tc>, window_params = [{transform_indices = @transform_0, window_bounds = array<i64: 256, 128>}, {transform_indices = @transform_1, window_bounds = array<i64: 128, 128>}, {transform_indices = @transform_2, window_bounds = array<i64: 1, 128>}, {transform_indices = @transform_3, window_bounds = array<i64: 256, 128>}]} {
    %c0_i32 = arith.constant 0 : i32
    %0 = arith.cmpi eq, %arg2, %c0_i32 : i32
    %1 = arith.extui %0 : i1 to i32
    %c0_i32_0 = arith.constant 0 : i32
    %2 = arith.cmpi ne, %1, %c0_i32_0 : i32
    scf.if %2 {
      %cst_10 = arith.constant 0.000000e+00 : f32
      %12 = vector.broadcast %cst_10 : f32 to vector<256x128xf32>
      %c0_11 = arith.constant 0 : index
      %c0_12 = arith.constant 0 : index
      %13 = vector.load %arg7[%c0_11, %c0_12] : memref<256x128xf32, #tpu.memory_space<vmem>>, vector<256x128xf32>
      tpu.vector_store %arg7[%c0_11, %c0_12], %12 {strides = array<i32>} : memref<256x128xf32, #tpu.memory_space<vmem>>, vector<256x128xf32>,
    } else {
    }
    %c0 = arith.constant 0 : index
    %c0_1 = arith.constant 0 : index
    %3 = vector.load %arg7[%c0, %c0_1] : memref<256x128xf32, #tpu.memory_space<vmem>>, vector<256x128xf32>
    %c0_2 = arith.constant 0 : index
    %c0_3 = arith.constant 0 : index
    %4 = vector.load %arg3[%c0_2, %c0_3] : memref<256x128xbf16, #tpu.memory_space<vmem>>, vector<256x128xbf16>
    %c0_4 = arith.constant 0 : index
    %c0_5 = arith.constant 0 : index
    %5 = vector.load %arg4[%c0_4, %c0_5] : memref<128x128xbf16, #tpu.memory_space<vmem>>, vector<128x128xbf16>
    %cst = arith.constant dense<0.000000e+00> : vector<256x128xf32>
    %6 = tpu.matmul %4, %5, %cst {dimension_numbers = #tpu.dot_dimension_numbers<[1], [0], [0], [1], [0, 0, 1, 1], [], []>} : vector<256x128xbf16>, vector<128x128xbf16>, vector<256x128xf32> -> vector<256x128xf32>
    %7 = arith.addf %3, %6 : vector<256x128xf32>
    %c0_6 = arith.constant 0 : index
    %c0_7 = arith.constant 0 : index
    %8 = vector.load %arg7[%c0_6, %c0_7] : memref<256x128xf32, #tpu.memory_space<vmem>>, vector<256x128xf32>
    tpu.vector_store %arg7[%c0_6, %c0_7], %7 {strides = array<i32>} : memref<256x128xf32, #tpu.memory_space<vmem>>, vector<256x128xf32>,
    %c0_i32_8 = arith.constant 0 : i32
    %9 = arith.cmpi eq, %arg2, %c0_i32_8 : i32
    %10 = arith.extui %9 : i1 to i32
    %c0_i32_9 = arith.constant 0 : i32
    %11 = arith.cmpi ne, %10, %c0_i32_9 : i32
    scf.if %11 {
      %c0_10 = arith.constant 0 : index
      %c0_11 = arith.constant 0 : index
      %12 = vector.load %arg7[%c0_10, %c0_11] : memref<256x128xf32, #tpu.memory_space<vmem>>, vector<256x128xf32>
      %c0_12 = arith.constant 0 : index
      %c0_13 = arith.constant 0 : index
      %13 = vector.load %arg5[%c0_12, %c0_13] : memref<1x128xf32, #tpu.memory_space<vmem>>, vector<1x128xf32>
      %14 = vector.broadcast %13 : vector<1x128xf32> to vector<256x128xf32>
      %15 = arith.addf %12, %14 : vector<256x128xf32>
      %c0_14 = arith.constant 0 : index
      %c0_15 = arith.constant 0 : index
      %16 = vector.load %arg6[%c0_14, %c0_15] : memref<256x128xf32, #tpu.memory_space<vmem>>, vector<256x128xf32>
      tpu.vector_store %arg6[%c0_14, %c0_15], %15 {strides = array<i32>} : memref<256x128xf32, #tpu.memory_space<vmem>>, vector<256x128xf32>,
    } else {
    }
    return
  }
  func.func @transform_0(%arg0: i32, %arg1: i32, %arg2: i32) -> (i32, i32) {
    %c0_i32 = arith.constant 0 : i32
    return %arg0, %arg2 : i32, i32
  }
  func.func @transform_1(%arg0: i32, %arg1: i32, %arg2: i32) -> (i32, i32) {
    %c0_i32 = arith.constant 0 : i32
    return %arg2, %arg1 : i32, i32
  }
  func.func @transform_2(%arg0: i32, %arg1: i32, %arg2: i32) -> (i32, i32) {
    %c0_i32 = arith.constant 0 : i32
    %c0_i32_0 = arith.constant 0 : i32
    return %c0_i32, %arg1 : i32, i32
  }
  func.func @transform_3(%arg0: i32, %arg1: i32, %arg2: i32) -> (i32, i32) {
    %c0_i32 = arith.constant 0 : i32
    return %arg0, %arg1 : i32, i32
  }
}

</mosaic_0001>

<bundles_post_ra>
// kernel: tpu_custom_call.1
= control target key start
LH: loop header
LB: loop body
LE: loop exit
PB: predicated region body
PF: predicated region fallthrough
CT: control target
= control target key end

     0   :  { %8 = vsyncpa [#allocation4], 0  ;;  %s1656_s0 = inlined_call_operand.hbm [shape: bf16[512,128], index: 0, kind: input, shape index: {}]   ;;  %s1657_s1 = inlined_call_operand.hbm [shape: bf16[128,128], index: 1, kind: input, shape index: {}]   ;;  %s1658_s2 = inlined_call_operand.vmem [shape: f32[1,128], index: 2, kind: input, shape index: {}]   ;;  %s1659_s3 = inlined_call_operand.hbm [shape: f32[512,128], index: 3, kind: output, shape index: {}]  }
   0x1   :  { %10 = vsyncpa [#allocation4 + $0x1], 0 }
   0x2   :  { %11 = vsyncpa [#allocation7], 0 }
   0x3   :  { %12 = vsyncpa [#allocation5], 0 }
   0x4   :  { %14 = vsyncpa [#allocation5 + $0x1], 0  ;;  %s1378_s12 = smov 0   ;;  %s1380_s13 = smov 0  }
   0x5   :  { %s1382_s14 = smov 0   ;;  %s1384_s15 = smov 0  }
   0x6   :  { %s1386_s16 = smov 0   ;;  %s1388_s17 = smov 0  }
   0x7 LB: > { %s977_s18 = sadd.s32 4294967295, %s1349_s17   ;;  %s978_s19 = sadd.s32 4294967294, %s1349_s17   ;;  %s1349_s17 = sphi %s1388_s17, %s20_s17   ;;  %s1345_s16 = sphi %s1386_s16, %s1681_s16   ;;  %s1341_s15 = sphi %s1384_s15, %s1680_s15   ;;  %s1337_s14 = sphi %s1382_s14, %s1679_s14   ;;  %s1333_s13 = sphi %s1380_s13, %s1678_s13   ;;  %s1329_s12 = sphi %s1378_s12, %s1677_s12  }
   0x8   : > { %p61_p0 = scmp.ne.s32.totalorder %s1333_s13, %s1329_s12  ;;  %p1412_p1 = scmp.eq.s32.totalorder %s977_s18, 0 }
   0x9   : > { %p1416_p2 = scmp.eq.s32.totalorder %s977_s18, 1  ;;  %p147_p3 = scmp.eq.s32.totalorder %s978_s19, 1 }
   0xa   : > { %p1422_p4 = por %p1412_p1, %p61_p0  ;;  %p979_p5 = scmp.ge.s32.totalorder %s1349_s17, 1 }
   0xb   : > { %p1427_p6 = por %p147_p3, %p61_p0  ;;  %p154_p7 = scmp.lt.s32.totalorder %s1349_s17, 3 }
   0xc   : > { %s1665_s22 = scalar_select %p1422_p4, 1, 0 }
   0xd   : > { %s1666_s23 = scalar_select %p1427_p6, 1, 0 }
   0xe   : > { %p1432_p8 = pnand %p979_p5, %p154_p7  ;;  %s1351_s25 = smov [#allocation6]  }
   0xf   : > { %s170_s26 = sshll.u32 %s1351_s25, 4  ;;  %s39_s28 = sadd.s32 1, %s1345_s16  ;;  %s171_s26 = int_to_ptr.vmem [resolvable:$true] %s170_s26 }
  0x10   : > { %p1118_p9 = pneg %p1432_p8  ;;  %s1222_s29 = scalar_lea.vmem %s171_s26, 1024 }
  0x11   : > { %p1223_p13 = scmp.ne.s32.totalorder %s171_s26, %s1222_s29  ;;  %p1230_p5 = scmp.lt.s32.totalorder %s171_s26, %s171_s26 }
  0x12   : > { %p1441_p11 = pnand %p1118_p9, %p1412_p1  ;;  %p1231_p7 = scmp.lt.s32.totalorder %s1222_s29, %s1222_s29 }
  0x14   : > { %p1213_p12 = pneg %p1441_p11  ;;  %p1232_p6 = por %p1231_p7, %p1230_p5 }
  0x16   : > { %p1225_p0 = pnand %p1223_p13, %p1213_p12 }
  0x18   : > { %p1226_p3 = pneg %p1225_p0 }
  0x1a   : > { %p1233_p4 = pnand %p1232_p6, %p1226_p3 }
  0x1c   : > { %1236 = shalt.err (!%p1233_p4)
}
  0x1d   : > { %s1661_s30 = smov 64   ;;  %s1662_s4 = smov 4  }
  0x1e   : > { %1121 = dma.hbm_to_vmem [thread:$0]  (!%p1441_p11), %s1657_s1, 1024, %s171_s26, [#allocation7], %s1661_s30, %s1661_s30, %s1662_s4  }
  0x1f   : > { %p41_p4 = scmp.ge.s32.totalorder %s39_s28, 2  ;;  %s48_s7 = sadd.s32 1, %s1337_s14 }
  0x20   : > { %p55_p6 = scmp.ne.s32.totalorder %s1337_s14, %s1333_s13  ;;  %p56_p9 = scmp.eq.s32.totalorder %s1349_s17, 0 }
  0x21   : > { %s1683_s28 = smov (%p41_p4, %s39_s28), 0  ;;  %p1131_p0 = scmp.lt.s32.totalorder %s1349_s17, 2 }
  0x22   : > { %p1462_p12 = por %p56_p9, %p55_p6  ;;  %p1468_p13 = por %p1416_p2, %p55_p6 }
  0x23   : > { %s43_s10 = ssub.s32 %s1345_s16, %s1683_s28  ;;  %s190_s11 = sand.u32 1, %s1337_s14  }
  0x24   : > { %p46_p11 = scmp.eq.s32.totalorder %s43_s10, 0  ;;  %s983_s18 = sshll.u32 %s190_s11, 7 }
  0x25   : > { %s1020_s25 = sshll.u32 %s1345_s16, 11  ;;  %s194_s5 = scalar_lea.vmem [#allocation3], %s983_s18 }
  0x26   : > { %s1477_s19 = scalar_select %p46_p11, %s1337_s14, %s48_s7  }
  0x27   : > { %s201_s29 = scalar_lea.hbm %s1656_s0, %s1020_s25  ;;  %s202_s6 = sshll.u32 %s194_s5, 4  ;;  %s203_s6 = int_to_ptr.vmem [resolvable:$true] %s202_s6 }
  0x28   : > { %p1485_p2 = pnand %p1131_p0, %p1462_p12  ;;  %s191_s30 = scalar_lea.sflag [#allocation4], %s190_s11 }
  0x29   : > { %s1250_s10 = scalar_lea.vmem %s203_s6, 2048  ;;  %s1354_s7 = smov [#allocation3]  }
  0x2a   : > { %p1239_p3 = pneg %p1485_p2  ;;  %p1251_p5 = scmp.ne.s32.totalorder %s203_s6, %s1250_s10 }
  0x2b   : > { %s1255_s4 = sshll.u32 %s1354_s7, 4  ;;  %s1256_s4 = int_to_ptr.vmem [resolvable:$false] %s1255_s4 }
  0x2c   : > { %p1253_p7 = pnand %p1251_p5, %p1239_p3  ;;  %s1257_s25 = scalar_lea.vmem %s1256_s4, 4096 }
  0x2d   : > { %p1258_p6 = scmp.lt.s32.totalorder %s203_s6, %s1256_s4  ;;  %p1259_p9 = scmp.lt.s32.totalorder %s1257_s25, %s1250_s10 }
  0x2e   : > { %p1254_p4 = pneg %p1253_p7 }
  0x2f   : > { %p1260_p11 = por %p1259_p9, %p1258_p6 }
  0x31   : > { %p1261_p10 = pnand %p1260_p11, %p1254_p4 }
  0x33   : > { %1264 = shalt.err (!%p1261_p10)
}
  0x34   : > { %s1672_s8 = smov 4   ;;  %s1673_s18 = smov 64  }
  0x35   : > { %1125 = dma.hbm_to_vmem [thread:$0]  (!%p1485_p2), %s201_s29, 2048, %s203_s6, %s191_s30, %s1673_s18, %s1673_s18, %s1672_s8  }
  0x36   : > { %214 = sbr.rel (%p1432_p8) target bundleno = 334 (0x14e), region = 32  ;;  %s1499_s11 = sand.u32 (!%p1432_p8), 1, %s1333_s13  }
  0x37   : > { %s987_s4 = sshll.u32 (!%p1432_p8), %s1499_s11, 7  ;;  %s217_s26 = scalar_lea.sflag (!%p1432_p8), [#allocation4], %s1499_s11 }
  0x38   : > { %s1503_s27 = scalar_lea.vmem (!%p1432_p8), [#allocation3], %s987_s4  ;;  %p1674_p10 = scmp.ne.s32.totalorder (!%p1432_p8), %s1665_s22, 0 }
  0x3b   : > { %1316 = dma.done.wait (%p1674_p10), %s217_s26, 2048  }
  0x3c   : > { %1318 = vsyncadd (%p1674_p10), %s217_s26, 4294965248 }
  0x3d   : > { %1320 = dma.done.wait (%p1412_p1), [#allocation7], 1024  }
  0x3e   : > { %1322 = vsyncadd (%p1412_p1), [#allocation7], 4294966272  ;;  %v1187_v0 = vld [vmem:[#allocation6 + $0x38] sm:$0xff]   ;;  %v1188_v1 = vld [vmem:[#allocation6 + $0x30] sm:$0xff]   ;;  %s989_s20 = sshll.u32 %s1499_s11, 8  ;;  %s1021_s29 = sshll.u32 %s1341_s15, 12 }
  0x3f   : > { %1046 = vmatprep.subr.bf16.mxu0 %v1187_v0  ;;  %1094 = vmatprep.subr.bf16.mxu1 %v1187_v0  ;;  %v1189_v2 = vld [vmem:[#allocation6 + $0x28] sm:$0xff]   ;;  %v1190_v3 = vld [vmem:[#allocation6 + $0x20] sm:$0xff]   ;;  %v1191_v6 = vld [vmem:[#allocation6 + $0x18] sm:$0xff]   ;;  %s1537_s30 = scalar_lea.vmem [#allocation8], %s989_s20  ;;  %s1600_s10 = scalar_lea.hbm %s1659_s3, %s1021_s29 }
  0x40   : > { %1047 = vmatpush3.bf16.msra.mxu0 %v1187_v0  ;;  %1102 = vmatpush3.bf16.msra.mxu1 %v1187_v0  ;;  %v1195_v4 = vld [vmem:[%s1503_s27] sm:$0xff]   ;;  %v1192_v7 = vld [vmem:[#allocation6 + $0x10] sm:$0xff]   ;;  %v1193_v8 = vld [vmem:[#allocation6 + $0x8] sm:$0xff]   ;;  %s863_s5 = sshll.u32 %s1537_s30, 4  ;;  %s849_s15 = scalar_lea.sflag [#allocation5], %s1499_s11  ;;  %s1602_s5 = int_to_ptr.vmem [resolvable:$true] %s863_s5 }
  0x41   : > { %1048 = vmatprep.subr.bf16.mxu0 %v1188_v1  ;;  %1095 = vmatprep.subr.bf16.mxu1 %v1188_v1  ;;  %v1196_v5 = vld [vmem:[%s1503_s27 + $0x40] sm:$0xff]   ;;  %v1197_v10 = vld [vmem:[%s1503_s27 + $0x8] sm:$0xff]   ;;  %v1199_v12 = vld [vmem:[%s1503_s27 + $0x10] sm:$0xff]   ;;  %s1265_s7 = scalar_lea.vmem %s1602_s5, 4096  ;;  %s1355_s25 = smov [#allocation8]  }
  0x42   : > { %1062 = vmatprep.mubr.bf16.mxu0 %v1195_v4  ;;  %1078 = vmatprep.mubr.bf16.mxu1 %v1196_v5  ;;  %v1194_v9 = vld [vmem:[#allocation6] sm:$0xff]   ;;  %v1198_v11 = vld [vmem:[%s1503_s27 + $0x48] sm:$0xff]   ;;  %v1200_v13 = vld [vmem:[%s1503_s27 + $0x50] sm:$0xff]   ;;  %p1266_p1 = scmp.ne.s32.totalorder %s1602_s5, %s1265_s7  ;;  %s1269_s8 = sshll.u32 %s1355_s25, 4  ;;  %s1270_s8 = int_to_ptr.vmem [resolvable:$false] %s1269_s8 }
  0x43   : > { %v1201_v14 = vld [vmem:[%s1503_s27 + $0x18] sm:$0xff]   ;;  %v1203_v16 = vld [vmem:[%s1503_s27 + $0x20] sm:$0xff]   ;;  %v1205_v18 = vld [vmem:[%s1503_s27 + $0x28] sm:$0xff]   ;;  %s1271_s18 = scalar_lea.vmem %s1270_s8, 8192  ;;  %p1272_p0 = scmp.lt.s32.totalorder %s1602_s5, %s1270_s8 }
  0x44   : > { %1049 = vmatpush3.bf16.msra.mxu0 %v1188_v1  ;;  %1103 = vmatpush3.bf16.msra.mxu1 %v1188_v1  ;;  %v1202_v15 = vld [vmem:[%s1503_s27 + $0x58] sm:$0xff]   ;;  %v1204_v17 = vld [vmem:[%s1503_s27 + $0x60] sm:$0xff]   ;;  %v1206_v19 = vld [vmem:[%s1503_s27 + $0x68] sm:$0xff]   ;;  %p1267_p8 = pnand %p1266_p1, %p1468_p13  ;;  %p1273_p2 = scmp.lt.s32.totalorder %s1271_s18, %s1265_s7 }
  0x45   : > { %1050 = vmatprep.subr.bf16.mxu0 %v1189_v2  ;;  %1096 = vmatprep.subr.bf16.mxu1 %v1189_v2  ;;  %v1207_v20 = vld [vmem:[%s1503_s27 + $0x30] sm:$0xff]   ;;  %v1209_v22 = vld [vmem:[%s1503_s27 + $0x38] sm:$0xff]   ;;  %v1533_v24 = vld [vmem:[%s1658_s2] ss:$0 sm:$0xff] }
  0x46   : > { %v1208_v21 = vld [vmem:[%s1503_s27 + $0x70] sm:$0xff]   ;;  %v1210_v23 = vld [vmem:[%s1503_s27 + $0x78] sm:$0xff]   ;;  %p1268_p12 = pneg %p1267_p8  ;;  %p1274_p3 = por %p1273_p2, %p1272_p0 }
  0x48   : > { %1051 = vmatpush3.bf16.msra.mxu0 %v1189_v2  ;;  %1104 = vmatpush3.bf16.msra.mxu1 %v1189_v2  ;;  %p1275_p5 = pnand %p1274_p3, %p1268_p12 }
  0x49   : > { %1052 = vmatprep.subr.bf16.mxu0 %v1190_v3  ;;  %1097 = vmatprep.subr.bf16.mxu1 %v1190_v3 }
  0x4c   : > { %1053 = vmatpush3.bf16.msra.mxu0 %v1190_v3  ;;  %1105 = vmatpush3.bf16.msra.mxu1 %v1190_v3 }
  0x4d   : > { %1054 = vmatprep.subr.bf16.mxu0 %v1191_v6  ;;  %1098 = vmatprep.subr.bf16.mxu1 %v1191_v6 }
  0x50   : > { %1055 = vmatpush3.bf16.msra.mxu0 %v1191_v6  ;;  %1106 = vmatpush3.bf16.msra.mxu1 %v1191_v6 }
  0x51   : > { %1056 = vmatprep.subr.bf16.mxu0 %v1192_v7  ;;  %1099 = vmatprep.subr.bf16.mxu1 %v1192_v7 }
  0x54   : > { %1057 = vmatpush3.bf16.msra.mxu0 %v1192_v7  ;;  %1107 = vmatpush3.bf16.msra.mxu1 %v1192_v7 }
  0x55   : > { %1058 = vmatprep.subr.bf16.mxu0 %v1193_v8  ;;  %1100 = vmatprep.subr.bf16.mxu1 %v1193_v8 }
  0x58   : > { %1059 = vmatpush3.bf16.msra.mxu0 %v1193_v8  ;;  %1108 = vmatpush3.bf16.msra.mxu1 %v1193_v8 }
  0x59   : > { %1060 = vmatprep.subr.bf16.mxu0 %v1194_v9  ;;  %1101 = vmatprep.subr.bf16.mxu1 %v1194_v9 }
  0x5c   : > { %1061 = vmatpush3.bf16.msra.mxu0 %v1194_v9  ;;  %1109 = vmatpush3.bf16.msra.mxu1 %v1194_v9 }
  0x5f   : > { %1063 = vmatmul.mubr.bf16.vlgmr.msra.gmra.mxu0 %v1197_v10  ;;  %1079 = vmatmul.mubr.bf16.vlgmr.msra.gmra.mxu1 %v1198_v11 }
  0x60   : > { %1066 = vmatprep.mubr.bf16.mxu0 %v1199_v12  ;;  %1082 = vmatprep.mubr.bf16.mxu1 %v1200_v13 }
  0x67   : > { %1067 = vmatmul.mubr.bf16.gmra.mxu0 %v1201_v14  ;;  %1083 = vmatmul.mubr.bf16.gmra.mxu1 %v1202_v15 }
  0x68   : > { %1070 = vmatprep.mubr.bf16.mxu0 %v1203_v16  ;;  %1086 = vmatprep.mubr.bf16.mxu1 %v1204_v17 }
  0x6f   : > { %1071 = vmatmul.mubr.bf16.gmra.mxu0 %v1205_v18  ;;  %1087 = vmatmul.mubr.bf16.gmra.mxu1 %v1206_v19 }
  0x70   : > { %1074 = vmatprep.mubr.bf16.mxu0 %v1207_v20  ;;  %1090 = vmatprep.mubr.bf16.mxu1 %v1208_v21 }
  0x77   : > { %1075 = vmatmul.mubr.bf16.gmra.mxu0 %v1209_v22  ;;  %1091 = vmatmul.mubr.bf16.gmra.mxu1 %v1210_v23 }
 0x11f   : > { %v1064_v25 = vpop.f32.mrf.mxu0  ;;  %v1080_v26 = vpop.f32.mrf.mxu1 }
 0x120   : > { %v786_v27 = vadd.f32 %v1064_v25, %v1533_v24  ;;  %v802_v28 = vadd.f32 %v1080_v26, %v1533_v24 }
 0x121   : > { %v551_v29 = vpop.f32.mrf.mxu0  ;;  %v615_v30 = vpop.f32.mrf.mxu1 }
 0x122   : > { %818 = vst [vmem:[%s1537_s30 + $0x10] sm:$0xff] %v786_v27  ;;  %834 = vst [vmem:[%s1537_s30 + $0x90] sm:$0xff] %v802_v28  ;;  %v784_v31 = vadd.f32 %v1533_v24, %v551_v29  ;;  %v800_v32 = vadd.f32 %v1533_v24, %v615_v30 }
 0x123   : > { %v1065_v33 = vpop.f32.mrf.mxu0  ;;  %v1081_v34 = vpop.f32.mrf.mxu1 }
 0x124   : > { %816 = vst [vmem:[%s1537_s30] sm:$0xff] %v784_v31  ;;  %832 = vst [vmem:[%s1537_s30 + $0x80] sm:$0xff] %v800_v32  ;;  %v787_v35 = vadd.f32 %v1065_v33, %v1533_v24  ;;  %v803_v36 = vadd.f32 %v1081_v34, %v1533_v24 }
 0x125   : > { %v554_v37 = vpop.f32.mrf.mxu0  ;;  %v618_v38 = vpop.f32.mrf.mxu1 }
 0x126   : > { %819 = vst [vmem:[%s1537_s30 + $0x18] sm:$0xff] %v787_v35  ;;  %835 = vst [vmem:[%s1537_s30 + $0x98] sm:$0xff] %v803_v36  ;;  %v785_v39 = vadd.f32 %v1533_v24, %v554_v37  ;;  %v801_v40 = vadd.f32 %v1533_v24, %v618_v38 }
 0x127   : > { %v1068_v41 = vpop.f32.mrf.mxu0  ;;  %v1084_v42 = vpop.f32.mrf.mxu1 }
 0x128   : > { %817 = vst [vmem:[%s1537_s30 + $0x8] sm:$0xff] %v785_v39  ;;  %833 = vst [vmem:[%s1537_s30 + $0x88] sm:$0xff] %v801_v40  ;;  %v790_v43 = vadd.f32 %v1068_v41, %v1533_v24  ;;  %v806_v44 = vadd.f32 %v1084_v42, %v1533_v24 }
 0x129   : > { %v567_v45 = vpop.f32.mrf.mxu0  ;;  %v631_v46 = vpop.f32.mrf.mxu1 }
 0x12a   : > { %822 = vst [vmem:[%s1537_s30 + $0x30] sm:$0xff] %v790_v43  ;;  %838 = vst [vmem:[%s1537_s30 + $0xb0] sm:$0xff] %v806_v44  ;;  %v788_v47 = vadd.f32 %v1533_v24, %v567_v45  ;;  %v804_v48 = vadd.f32 %v1533_v24, %v631_v46 }
 0x12b   : > { %v1069_v49 = vpop.f32.mrf.mxu0  ;;  %v1085_v50 = vpop.f32.mrf.mxu1 }
 0x12c   : > { %820 = vst [vmem:[%s1537_s30 + $0x20] sm:$0xff] %v788_v47  ;;  %836 = vst [vmem:[%s1537_s30 + $0xa0] sm:$0xff] %v804_v48  ;;  %v791_v51 = vadd.f32 %v1069_v49, %v1533_v24  ;;  %v807_v52 = vadd.f32 %v1085_v50, %v1533_v24 }
 0x12d   : > { %v570_v53 = vpop.f32.mrf.mxu0  ;;  %v634_v54 = vpop.f32.mrf.mxu1 }
 0x12e   : > { %823 = vst [vmem:[%s1537_s30 + $0x38] sm:$0xff] %v791_v51  ;;  %839 = vst [vmem:[%s1537_s30 + $0xb8] sm:$0xff] %v807_v52  ;;  %v789_v55 = vadd.f32 %v1533_v24, %v570_v53  ;;  %v805_v56 = vadd.f32 %v1533_v24, %v634_v54 }
 0x12f   : > { %v1072_v57 = vpop.f32.mrf.mxu0  ;;  %v1088_v58 = vpop.f32.mrf.mxu1 }
 0x130   : > { %821 = vst [vmem:[%s1537_s30 + $0x28] sm:$0xff] %v789_v55  ;;  %837 = vst [vmem:[%s1537_s30 + $0xa8] sm:$0xff] %v805_v56  ;;  %v794_v59 = vadd.f32 %v1072_v57, %v1533_v24  ;;  %v810_v60 = vadd.f32 %v1088_v58, %v1533_v24 }
 0x131   : > { %v583_v61 = vpop.f32.mrf.mxu0  ;;  %v647_v62 = vpop.f32.mrf.mxu1 }
 0x132   : > { %826 = vst [vmem:[%s1537_s30 + $0x50] sm:$0xff] %v794_v59  ;;  %842 = vst [vmem:[%s1537_s30 + $0xd0] sm:$0xff] %v810_v60  ;;  %v792_v63 = vadd.f32 %v1533_v24, %v583_v61  ;;  %v808_v0 = vadd.f32 %v1533_v24, %v647_v62 }
 0x133   : > { %v1073_v1 = vpop.f32.mrf.mxu0  ;;  %v1089_v2 = vpop.f32.mrf.mxu1 }
 0x134   : > { %824 = vst [vmem:[%s1537_s30 + $0x40] sm:$0xff] %v792_v63  ;;  %840 = vst [vmem:[%s1537_s30 + $0xc0] sm:$0xff] %v808_v0  ;;  %v795_v3 = vadd.f32 %v1073_v1, %v1533_v24  ;;  %v811_v4 = vadd.f32 %v1089_v2, %v1533_v24 }
 0x135   : > { %v586_v5 = vpop.f32.mrf.mxu0  ;;  %v650_v6 = vpop.f32.mrf.mxu1 }
 0x136   : > { %827 = vst [vmem:[%s1537_s30 + $0x58] sm:$0xff] %v795_v3  ;;  %843 = vst [vmem:[%s1537_s30 + $0xd8] sm:$0xff] %v811_v4  ;;  %v793_v7 = vadd.f32 %v1533_v24, %v586_v5  ;;  %v809_v8 = vadd.f32 %v1533_v24, %v650_v6 }
 0x137   : > { %v1076_v9 = vpop.f32.mrf.mxu0  ;;  %v1092_v10 = vpop.f32.mrf.mxu1 }
 0x138   : > { %825 = vst [vmem:[%s1537_s30 + $0x48] sm:$0xff] %v793_v7  ;;  %841 = vst [vmem:[%s1537_s30 + $0xc8] sm:$0xff] %v809_v8  ;;  %v798_v11 = vadd.f32 %v1076_v9, %v1533_v24  ;;  %v814_v12 = vadd.f32 %v1092_v10, %v1533_v24 }
 0x139   : > { %v599_v13 = vpop.f32.mrf.mxu0  ;;  %v663_v14 = vpop.f32.mrf.mxu1 }
 0x13a   : > { %830 = vst [vmem:[%s1537_s30 + $0x70] sm:$0xff] %v798_v11  ;;  %846 = vst [vmem:[%s1537_s30 + $0xf0] sm:$0xff] %v814_v12  ;;  %v796_v15 = vadd.f32 %v1533_v24, %v599_v13  ;;  %v812_v16 = vadd.f32 %v1533_v24, %v663_v14 }
 0x13b   : > { %v1077_v17 = vpop.f32.mrf.mxu0  ;;  %v1093_v18 = vpop.f32.mrf.mxu1 }
 0x13c   : > { %828 = vst [vmem:[%s1537_s30 + $0x60] sm:$0xff] %v796_v15  ;;  %844 = vst [vmem:[%s1537_s30 + $0xe0] sm:$0xff] %v812_v16  ;;  %v799_v19 = vadd.f32 %v1077_v17, %v1533_v24  ;;  %v815_v20 = vadd.f32 %v1093_v18, %v1533_v24 }
 0x13d   : > { %v602_v21 = vpop.f32.mrf.mxu0  ;;  %v666_v22 = vpop.f32.mrf.mxu1 }
 0x13e   : > { %831 = vst [vmem:[%s1537_s30 + $0x78] sm:$0xff] %v799_v19  ;;  %847 = vst [vmem:[%s1537_s30 + $0xf8] sm:$0xff] %v815_v20  ;;  %v797_v23 = vadd.f32 %v1533_v24, %v602_v21  ;;  %v813_v25 = vadd.f32 %v1533_v24, %v666_v22 }
 0x140   : > { %829 = vst [vmem:[%s1537_s30 + $0x68] sm:$0xff] %v797_v23  ;;  %845 = vst [vmem:[%s1537_s30 + $0xe8] sm:$0xff] %v813_v25 }
 0x141   : > { %1278 = shalt.err (!%p1275_p5)
}
 0x142   : > { %s1279_s4 = scalar_lea.hbm %s1600_s10, 4096  ;;  %s1283_s20 = scalar_lea.hbm %s1659_s3, 8192 }
 0x143   : > { %p1280_p7 = scmp.ne.s32.totalorder %s1600_s10, %s1279_s4  ;;  %p1284_p9 = scmp.lt.s32.totalorder %s1600_s10, %s1659_s3 }
 0x144   : > { %p1285_p11 = scmp.lt.s32.totalorder %s1283_s20, %s1279_s4 }
 0x145   : > { %p1281_p4 = pnand %p1280_p7, %p1468_p13 }
 0x146   : > { %p1286_p10 = por %p1285_p11, %p1284_p9 }
 0x147   : > { %p1282_p6 = pneg %p1281_p4 }
 0x149   : > { %p1287_p1 = pnand %p1286_p10, %p1282_p6 }
 0x14b   : > { %1290 = shalt.err (!%p1287_p1)
}
 0x14c   : > { %s1356_s30 = smov 128   ;;  %s1357_s29 = smov 8  }
 0x14d   : > { %1116 = dma.vmem_to_hbm [thread:$0]  (%p1468_p13), %s1602_s5, 4096, %s1600_s10, %s849_s15, %s1356_s30, %s1356_s30, %s1357_s29  }
 0x14e PF: > { %s878_s6 = sand.u32 1, %s1329_s12   ;;  %p1675_p8 = scmp.ne.s32.totalorder %s1666_s23, 0 }
 0x14f   : > { %p1676_p12 = scmp.ge.s32.totalorder %s1349_s17, 2  ;;  %s879_s21 = scalar_lea.sflag [#allocation5], %s878_s6 }
 0x151   : > { %p1127_p0 = pnand %p1676_p12, %p1675_p8 }
 0x153   : > { %p1128_p2 = pneg %p1127_p0 }
 0x155   : > { %1324 = dma.done.wait (%p1128_p2), %s879_s21, 4096  }
 0x156   : > { %1326 = vsyncadd (%p1128_p2), %s879_s21, 4294963200  ;;  %s20_s17 = sadd.s32 1, %s1349_s17   ;;  %s1677_s12 = smov %s1333_s13 }
 0x157   : > { %p17_p3 = scmp.ge.s32.totalorder %s20_s17, 4   ;;  %s1678_s13 = smov %s1337_s14 }
 0x158   : > { %s1679_s14 = smov %s1477_s19  ;;  %s1680_s15 = smov %s1345_s16 }
 0x159   : > { %s1681_s16 = smov %s1683_s28  ;;  %19 = sbr.rel (!%p17_p3) target bundleno = 7 (0x7), region = 93 }
 0x15e   :  { %884 = vsyncpa [#allocation4], 1 }
 0x15f   :  { %886 = vsyncpa [#allocation4 + $0x1], 1 }
 0x160   :  { %887 = vsyncpa [#allocation7], 1 }
 0x161   :  { %888 = vsyncpa [#allocation5], 1 }
 0x162   :  { %890 = vsyncpa [#allocation5 + $0x1], 1 }

</bundles_post_ra>
